<compile_context>
chip_gen: v6e
topology: v6e:2x2x1
jax: 0.10.0
libtpu: 0.0.40
codegen_flags: <defaults>
</compile_context>

<pallas_src>
import functools
import math

import jax
import jax.numpy as jnp
from jax.experimental import pallas as pl
from jax.experimental.pallas import tpu as pltpu


_LANE = 128
_LANE_CANDIDATES = (4096, 2048, 1024, 512, 256, 128)
_MIN_PIPELINE_BYTES = 1 * 1024 * 1024      # force >=4 grid steps above this size
_SMALL_RAGGED_BYTES = 256 * 1024           # single-block (1, total) path below this


def _cdiv(a, b):
    return -(-a // b)


def _round_up(a, m):
    return _cdiv(a, m) * m


def _sublane_min(itemsize: int) -> int:
    # Minimum second-minor tile rows for the dtype (f32:8, bf16:16, int8/fp8:32).
    return {4: 8, 2: 16, 1: 32}.get(itemsize, 8)


@functools.lru_cache(maxsize=None)
def _tpu_config():
    """(target_block_bytes, vmem_limit_bytes or None), generation-aware."""
    block = 2 * 1024 * 1024          # safe default (v5e scoped VMEM = 16 MiB)
    vmem_limit = None
    try:
        kind = jax.devices()[0].device_kind.lower()
    except Exception:                # pragma: no cover - no device at trace time
        return block, vmem_limit
    if "v7" in kind:
        block = 8 * 1024 * 1024      # 8 MiB x 2 arrays x 2 buffers = 32 MiB
        vmem_limit = 48 * 1024 * 1024
    elif "v6" in kind:
        block = 4 * 1024 * 1024      # 16 MiB total, under the 32 MiB scoped default
    return block, vmem_limit


def _plan_layout(total: int, itemsize: int):
    """Pick (padded_total, width, rows, tile_m) for a flat array of `total` elems.

    Pure trace-time Python (static shapes).  padded_total == total except for the
    rare "large and not a multiple of 128" case.
    """
    sub = _sublane_min(itemsize)
    block_bytes, _ = _tpu_config()

    if total % _LANE != 0:
        if total * itemsize <= _SMALL_RAGGED_BYTES:
            # Single block whose shape equals the full (1, total) array: no padding,
            # no slicing, still a Pallas kernel.
            return total, total, 1, 1
        # TODO(synk): rare large-ragged path still pays one pad + one slice copy; a
        # masked 1D / aligned-prefix kernel would avoid it but isn't worth it here.
        padded = _round_up(total, 8 * _LANE)
    else:
        padded = total

    width = max(w for w in _LANE_CANDIDATES if padded % w == 0)
    rows = padded // width
    row_bytes = width * itemsize

    # Biggest tile that hits the per-generation block-byte target.
    tile_m = max(sub, (block_bytes // row_bytes) // sub * sub)

    # Guarantee >= 4 grid steps for tensors big enough to benefit from pipelining.
    if padded * itemsize >= _MIN_PIPELINE_BYTES:
        cap = (rows // 4) // sub * sub
        if cap >= sub:
            tile_m = min(tile_m, cap)

    if tile_m >= rows:
        tile_m = rows                 # single full-extent block (always a legal shape)
    else:
        # Prefer an even step count (v7x dual TensorCores); no-op on v5e/v6e.
        g = _cdiv(rows, tile_m)
        if g % 2 == 1:
            tm2 = _round_up(_cdiv(rows, g + 1), sub)
            if sub <= tm2 < rows and _cdiv(rows, tm2) % 2 == 0:
                tile_m = tm2

    return padded, width, rows, tile_m


def _sparse_kernel(k_ref, x_ref, o_ref):
    # k_ref: SMEM scalar-prefetch ref with the threshold (f32 for float x, i32 for int x)
    # x_ref / o_ref: VMEM tiles of shape (tile_m, width)
    x = x_ref[...]
    k = k_ref[0]
    if jnp.issubdtype(x.dtype, jnp.floating):
        mask = jnp.abs(x) < k.astype(x.dtype)          # compare in native dtype
    else:
        mask = jnp.abs(x.astype(jnp.int32)) < k        # k is ceil(k) as int32
    o_ref[...] = jnp.where(mask, jnp.zeros_like(x), x)


def _sparse_threshold_2d(x2d, k_arr, tile_m):
    rows, width = x2d.shape
    nbytes = x2d.size * x2d.dtype.itemsize
    _, vmem_limit = _tpu_config()
    cp_kwargs = dict(dimension_semantics=("parallel",))
    if vmem_limit is not None:
        cp_kwargs["vmem_limit_bytes"] = vmem_limit

    grid_spec = pltpu.PrefetchScalarGridSpec(
        num_scalar_prefetch=1,
        grid=(pl.cdiv(rows, tile_m),),                 # masked last block; no divisor hunt
        in_specs=[pl.BlockSpec((tile_m, width), lambda i, k: (i, 0))],
        out_specs=pl.BlockSpec((tile_m, width), lambda i, k: (i, 0)),
    )
    return pl.pallas_call(
        _sparse_kernel,
        out_shape=jax.ShapeDtypeStruct((rows, width), x2d.dtype),
        grid_spec=grid_spec,
        compiler_params=pltpu.CompilerParams(**cp_kwargs),
        cost_estimate=pl.CostEstimate(
            flops=x2d.size, transcendentals=0, bytes_accessed=2 * nbytes
        ),
    )(k_arr, x2d)


@jax.jit
def _sparse_apply_jit(x, k):
    orig_shape = x.shape
    total = math.prod(orig_shape) if orig_shape else 1

    if jnp.issubdtype(x.dtype, jnp.floating):
        k_arr = k.astype(jnp.float32).reshape(1)
    else:
        # Integer-domain threshold: |x| < k  <=>  |x| < ceil(k)  for integer |x|.
        k_arr = jnp.ceil(k.astype(jnp.float32)).astype(jnp.int32).reshape(1)

    padded, width, rows, tile_m = _plan_layout(total, x.dtype.itemsize)

    flat = jnp.ravel(x)
    if padded != total:                                  # rare large-ragged case only
        flat = jnp.pad(flat, (0, padded - total))
    x2d = flat.reshape(rows, width)

    out2d = _sparse_threshold_2d(x2d, k_arr, tile_m)

    out = out2d.reshape(-1)
    if padded != total:
        out = out[:total]
    return out.reshape(orig_shape)


def sparse_apply(x, k):
    """where(|x| < k, 0, x) for arbitrary shape, via a Pallas TPU kernel."""
    return _sparse_apply_jit(x, jnp.asarray(k, jnp.float32))


class Sparse:
    """JAX/Pallas port of the PyTorch Sparse module (stateful k schedule)."""

    def __init__(self, dataset):
        self.dataset = dataset
        self.last_k = 0

    # Pure-Python scalar schedule, exactly mirroring the PyTorch control flow.
    # TODO(synk): uses concrete Python epoch/l0_norm; not traceable under an outer jit.
    def get_k(self, epoch, l0_norm):
        l0_norm_threshold = 40
        start = 250
        maximum = 1
        end = 500
        minimum = 0
        if self.dataset == 'indian_pines':
            l0_norm_threshold = 50
        if l0_norm <= l0_norm_threshold:
            return self.last_k
        if epoch < start:
            return minimum
        elif epoch > end:
            return maximum
        else:
            return (epoch - start) * (maximum / (end - start))

    def forward(self, X, epoch, l0_norm):
        self.last_k = self.get_k(epoch, l0_norm)
        return sparse_apply(X, self.last_k)

    __call__ = forward


if __name__ == "__main__":
    key = jax.random.PRNGKey(0)
    # Small NCHW-style input consistent with typical usage.
    x = jax.random.normal(key, (2, 4, 16, 16), dtype=jnp.float32)

    model = Sparse(dataset="indian_pines")

    # Mid-schedule epoch with l0_norm above threshold -> k = (375-250)/250 = 0.5
    epoch, l0_norm = 375, 100
    out = jax.block_until_ready(model(x, epoch, l0_norm))
    k = model.last_k
    ref = jnp.where(jnp.abs(x) < k, 0.0, x)
    assert jnp.allclose(out, ref), "mismatch vs reference"

    # "Keep last_k" branch (l0_norm below threshold).
    out2 = jax.block_until_ready(model(x, epoch=10, l0_norm=5))
    ref2 = jnp.where(jnp.abs(x) < model.last_k, 0.0, x)
    assert jnp.allclose(out2, ref2), "mismatch vs reference (branch 2)"

    # bf16 input exercises the dtype-aware (16,128) sublane-minimum path.
    xb = x.astype(jnp.bfloat16)
    outb = jax.block_until_ready(sparse_apply(xb, model.last_k))
    refb = jnp.where(jnp.abs(xb) < jnp.bfloat16(model.last_k), jnp.bfloat16(0), xb)
    assert jnp.array_equal(outb, refb), "mismatch vs reference (bf16)"

    # Ragged shape exercises the zero-padding single-block (1, total) path.
    xr = jax.random.normal(jax.random.PRNGKey(1), (3, 5, 7), dtype=jnp.float32)
    outr = jax.block_until_ready(sparse_apply(xr, 0.5))
    refr = jnp.where(jnp.abs(xr) < 0.5, 0.0, xr)
    assert jnp.allclose(outr, refr), "mismatch vs reference (ragged)"

    # Larger multiple-of-128 tensor exercises the multi-step pipelined path.
    xl = jax.random.normal(jax.random.PRNGKey(2), (64, 4096), dtype=jnp.float32)
    outl = jax.block_until_ready(sparse_apply(xl, 0.5))
    refl = jnp.where(jnp.abs(xl) < 0.5, 0.0, xl)
    assert jnp.allclose(outl, refl), "mismatch vs reference (large)"

    print("KERNEL_OK")
</pallas_src>

<mosaic_0001>
module attributes {stable_mosaic.version = 11 : i64} {
  func.func @_sparse_kernel(%arg0: i32, %arg1: memref<1xf32, #tpu.memory_space<smem>>, %arg2: memref<1x2048xf32, #tpu.memory_space<vmem>>, %arg3: memref<1x2048xf32, #tpu.memory_space<vmem>>) attributes {dimension_semantics = [#tpu.dimension_semantics<parallel>], iteration_bounds = array<i64: 1>, scalar_prefetch = 1 : i64, scratch_operands = 0 : i64, tpu.core_type = #tpu.core_type<tc>, window_params = [{transform_indices = @transform_0, window_bounds = array<i64: 1, 2048>}, {transform_indices = @transform_1, window_bounds = array<i64: 1, 2048>}]} {
    %c0 = arith.constant 0 : index
    %c0_0 = arith.constant 0 : index
    %0 = vector.load %arg2[%c0, %c0_0] : memref<1x2048xf32, #tpu.memory_space<vmem>>, vector<1x2048xf32>
    %c0_1 = arith.constant 0 : index
    %1 = memref.load %arg1[%c0_1] : memref<1xf32, #tpu.memory_space<smem>>
    %2 = math.absf %0 : vector<1x2048xf32>
    %3 = vector.broadcast %1 : f32 to vector<1x2048xf32>
    %4 = arith.cmpf olt, %2, %3 : vector<1x2048xf32>
    %cst = arith.constant 0.000000e+00 : f32
    %5 = vector.broadcast %cst : f32 to vector<1x2048xf32>
    %6 = arith.select %4, %5, %0 : vector<1x2048xi1>, vector<1x2048xf32>
    %c0_2 = arith.constant 0 : index
    %c0_3 = arith.constant 0 : index
    %7 = vector.load %arg3[%c0_2, %c0_3] : memref<1x2048xf32, #tpu.memory_space<vmem>>, vector<1x2048xf32>
    tpu.vector_store %arg3[%c0_2, %c0_3], %6 {strides = array<i32>} : memref<1x2048xf32, #tpu.memory_space<vmem>>, vector<1x2048xf32>,
    return
  }
  func.func @transform_0(%arg0: i32, %arg1: memref<1xf32, #tpu.memory_space<smem>>) -> (i32, i32) {
    %c0_i32 = arith.constant 0 : i32
    %c0_i32_0 = arith.constant 0 : i32
    return %arg0, %c0_i32 : i32, i32
  }
  func.func @transform_1(%arg0: i32, %arg1: memref<1xf32, #tpu.memory_space<smem>>) -> (i32, i32) {
    %c0_i32 = arith.constant 0 : i32
    %c0_i32_0 = arith.constant 0 : i32
    return %arg0, %c0_i32 : i32, i32
  }
}

</mosaic_0001>

<bundles_post_ra>
// kernel: _sparse_apply_jit.1
= control target key start
LH: loop header
LB: loop body
LE: loop exit
PB: predicated region body
PF: predicated region fallthrough
CT: control target
= control target key end

     0   :  { %s56_s0 = inlined_call_operand.<no memory space> [shape: f32[1], index: 0, kind: input, shape index: {}]   ;;  %s57_s1 = inlined_call_operand.vmem [shape: f32[1,2048], index: 1, kind: input, shape index: {}]   ;;  %s58_s2 = inlined_call_operand.vmem [shape: f32[1,2048], index: 2, kind: output, shape index: {}]  }
   0x1   :  { %v10_v0 = vld [vmem:[%s57_s1] sm:$0xff]  ;;  %v15_v1 = vstv %s56_s0  ;;  %v11_v2 = vld [vmem:[%s57_s1 + $0x8] sm:$0xff] }
   0x2   :  { %v13_v3 = vand.u32 2147483647, %v10_v0  ;;  %v14_v4 = vand.u32 2147483647, %v11_v2 }
   0x4   :  { %vm16_vm0 = vcmp.lt.f32.partialorder %v13_v3, %v15_v1  ;;  %vm17_vm1 = vcmp.lt.f32.partialorder %v14_v4, %v15_v1 }
   0x5   :  { %v18_v5 = vsel %vm16_vm0, 0.0, %v10_v0  ;;  %v19_v6 = vsel %vm17_vm1, 0.0, %v11_v2 }
   0x6   :  { %20 = vst [vmem:[%s58_s2] sm:$0xff] %v18_v5  ;;  %21 = vst [vmem:[%s58_s2 + $0x8] sm:$0xff] %v19_v6 }

</bundles_post_ra>
